<compile_context>
chip_gen: v5e
topology: v5e:2x2
jax: 0.10.0
libtpu: 0.0.40
codegen_flags: <defaults>
</compile_context>

<pallas_src>
import math

import jax
import jax.numpy as jnp
from jax import lax
from jax.experimental import pallas as pl
from jax.experimental.pallas import tpu as pltpu


def _attention_kernel(x_ref, wq_ref, wk_ref, wv_ref, wo_ref, bo_ref,
                      o_ref, acc_ref):
    # x_ref:  (N, D)        current batch element (batch dim squeezed)
    # wq/wk/wv_ref: (D, dh) current head's projection weights (scale in wq)
    # wo_ref: (dh, D)       current head's slice of the output projection
    # bo_ref: (1, D)        output projection bias
    # o_ref:  (N, D)        output block (resident across the head axis)
    # acc_ref:(N, D) f32    output-projection accumulator
    h = pl.program_id(1)

    @pl.when(h == 0)
    def _init():
        acc_ref[...] = jnp.zeros_like(acc_ref)

    dt = x_ref.dtype
    x = x_ref[...]                                            # (N, D)

    # Per-head projections: native-dtype MXU operands, f32 accumulation.
    q = jnp.dot(x, wq_ref[...], preferred_element_type=jnp.float32).astype(dt)
    k = jnp.dot(x, wk_ref[...], preferred_element_type=jnp.float32).astype(dt)
    v = jnp.dot(x, wv_ref[...], preferred_element_type=jnp.float32).astype(dt)

    # Scores: contract last dims directly — no explicit k.T (no XLU transpose).
    s = lax.dot_general(q, k, (((1,), (1,)), ((), ())),
                        preferred_element_type=jnp.float32)   # (N, N) f32

    # Numerically stable softmax in f32; reciprocal goes to the EUP slot.
    s = s - jnp.max(s, axis=-1, keepdims=True)
    p = jnp.exp(s)
    p = p * pl.reciprocal(jnp.sum(p, axis=-1, keepdims=True), approx=True)

    # P @ V, then accumulate this head's contribution to the output projection
    # (per-head accumulation instead of a lane-axis concat + one big matmul).
    o_h = jnp.dot(p.astype(dt), v, preferred_element_type=jnp.float32).astype(dt)
    acc_ref[...] += jnp.dot(o_h, wo_ref[...],
                            preferred_element_type=jnp.float32)

    @pl.when(h == pl.num_programs(1) - 1)
    def _finalize():
        o_ref[...] = (acc_ref[...] + bo_ref[...]).astype(o_ref.dtype)


def prepare_params(w_qkv, w_out, b_out, *, heads, dim_head):
    """Convert PyTorch-layout weights into the kernel's per-head layout.

    w_qkv: (3*inner, D)  to_qkv.weight   (rows ordered [q | k | v])
    w_out: (D, inner)    to_out[0].weight
    b_out: (D,)          to_out[0].bias
    """
    D = w_qkv.shape[1]
    scale = dim_head ** (-0.5)
    w3 = w_qkv.reshape(3, heads, dim_head, D)                 # (3, H, dh, D)
    wq = jnp.transpose(w3[0], (0, 2, 1)) * scale              # (H, D, dh), scale folded
    wk = jnp.transpose(w3[1], (0, 2, 1))                      # (H, D, dh)
    wv = jnp.transpose(w3[2], (0, 2, 1))                      # (H, D, dh)
    wo = jnp.transpose(w_out.reshape(D, heads, dim_head), (1, 2, 0))  # (H, dh, D)
    return wq, wk, wv, wo, b_out.reshape(1, D)


def attention_forward(x, wq, wk, wv, wo, b_out, *, heads, dim_head):
    """x: (B, N, D); per-head weights from prepare_params."""
    B, N, D = x.shape
    dh = dim_head

    # Advisory cost hint for XLA's scheduler.
    flops = 2 * B * heads * N * dh * (4 * D + 2 * N)
    transcendentals = B * heads * N * N
    itemsize = jnp.dtype(x.dtype).itemsize
    bytes_accessed = itemsize * (
        x.size + wq.size + wk.size + wv.size + wo.size + b_out.size + B * N * D)

    return pl.pallas_call(
        _attention_kernel,
        out_shape=jax.ShapeDtypeStruct((B, N, D), x.dtype),
        grid_spec=pltpu.PrefetchScalarGridSpec(
            num_scalar_prefetch=0,
            grid=(B, heads),                     # heads last = reduction axis
            in_specs=[
                pl.BlockSpec((pl.Squeezed(), N, D), lambda b, h: (b, 0, 0)),
                pl.BlockSpec((pl.Squeezed(), D, dh), lambda b, h: (h, 0, 0)),
                pl.BlockSpec((pl.Squeezed(), D, dh), lambda b, h: (h, 0, 0)),
                pl.BlockSpec((pl.Squeezed(), D, dh), lambda b, h: (h, 0, 0)),
                pl.BlockSpec((pl.Squeezed(), dh, D), lambda b, h: (h, 0, 0)),
                pl.BlockSpec((1, D), lambda b, h: (0, 0)),
            ],
            out_specs=pl.BlockSpec((pl.Squeezed(), N, D), lambda b, h: (b, 0, 0)),
            scratch_shapes=[pltpu.VMEM((N, D), jnp.float32)],
        ),
        compiler_params=pltpu.CompilerParams(
            dimension_semantics=("parallel", "arbitrary")),
        cost_estimate=pl.CostEstimate(flops=flops,
                                      transcendentals=transcendentals,
                                      bytes_accessed=bytes_accessed),
    )(x, wq, wk, wv, wo, b_out)


def attention_reference(x, w_qkv, w_out, b_out, *, heads, dim_head):
    """Pure-JAX reference matching the PyTorch forward (eval: dropout=0)."""
    B, N, D = x.shape
    inner = heads * dim_head
    scale = dim_head ** (-0.5)
    qkv = x @ w_qkv.T                                          # (B, N, 3*inner)
    q, k, v = jnp.split(qkv, 3, axis=-1)

    def to_heads(t):  # 'b n (h d) -> b h n d'
        return t.reshape(B, N, heads, dim_head).transpose(0, 2, 1, 3)

    q, k, v = map(to_heads, (q, k, v))
    dots = jnp.einsum('bhnd,bhmd->bhnm', q, k) * scale
    attn = jax.nn.softmax(dots, axis=-1)
    out = jnp.einsum('bhnm,bhmd->bhnd', attn, v)
    out = out.transpose(0, 2, 1, 3).reshape(B, N, inner)       # 'b h n d -> b n (h d)'
    return out @ w_out.T + b_out


if __name__ == "__main__":
    # Small shapes consistent with the module's forward: x is (B, N, dim).
    B, N, dim = 2, 8, 32
    heads, dim_head = 2, 16
    inner_dim = heads * dim_head  # 32; project_out is True since heads != 1

    key = jax.random.PRNGKey(0)
    kx, kqkv, kout, kb = jax.random.split(key, 4)

    x = jax.random.normal(kx, (B, N, dim), dtype=jnp.float32)

    # Deterministic parameter init in PyTorch nn.Linear layout/ranges.
    bound_qkv = 1.0 / math.sqrt(dim)
    w_qkv = jax.random.uniform(kqkv, (3 * inner_dim, dim),
                               minval=-bound_qkv, maxval=bound_qkv,
                               dtype=jnp.float32)
    bound_out = 1.0 / math.sqrt(inner_dim)
    w_out = jax.random.uniform(kout, (dim, inner_dim),
                               minval=-bound_out, maxval=bound_out,
                               dtype=jnp.float32)
    b_out = jax.random.uniform(kb, (dim,),
                               minval=-bound_out, maxval=bound_out,
                               dtype=jnp.float32)

    wq, wk, wv, wo, bo = prepare_params(w_qkv, w_out, b_out,
                                        heads=heads, dim_head=dim_head)

    out = attention_forward(x, wq, wk, wv, wo, bo,
                            heads=heads, dim_head=dim_head)
    out = jax.block_until_ready(out)

    ref = attention_reference(x, w_qkv, w_out, b_out,
                              heads=heads, dim_head=dim_head)
    assert out.shape == (B, N, dim)
    # Tolerance accounts for the approximate (EUP) reciprocal in the softmax.
    assert jnp.allclose(out, ref, atol=2e-3, rtol=2e-3), "mismatch vs JAX reference"

    print("KERNEL_OK")
</pallas_src>

<mosaic_0001>
module attributes {stable_mosaic.version = 11 : i64} {
  func.func @_attention_kernel(%arg0: i32, %arg1: i32, %arg2: memref<1x8x32xf32, #tpu.memory_space<vmem>>, %arg3: memref<1x32x16xf32, #tpu.memory_space<vmem>>, %arg4: memref<1x32x16xf32, #tpu.memory_space<vmem>>, %arg5: memref<1x32x16xf32, #tpu.memory_space<vmem>>, %arg6: memref<1x16x32xf32, #tpu.memory_space<vmem>>, %arg7: memref<1x32xf32, #tpu.memory_space<vmem>>, %arg8: memref<1x8x32xf32, #tpu.memory_space<vmem>>, %arg9: memref<8x32xf32, #tpu.memory_space<vmem>>) attributes {dimension_semantics = [#tpu.dimension_semantics<parallel>, #tpu.dimension_semantics<arbitrary>], iteration_bounds = array<i64: 2, 2>, scalar_prefetch = 0 : i64, scratch_operands = 1 : i64, tpu.core_type = #tpu.core_type<tc>, window_params = [{transform_indices = @transform_0, window_bounds = array<i64: 1, 8, 32>}, {transform_indices = @transform_1, window_bounds = array<i64: 1, 32, 16>}, {transform_indices = @transform_2, window_bounds = array<i64: 1, 32, 16>}, {transform_indices = @transform_3, window_bounds = array<i64: 1, 32, 16>}, {transform_indices = @transform_4, window_bounds = array<i64: 1, 16, 32>}, {pipeline_mode = #tpu.pipeline_mode<synchronous>, transform_indices = @transform_5, window_bounds = array<i64: 1, 32>}, {transform_indices = @transform_6, window_bounds = array<i64: 1, 8, 32>}]} {
    %c0_i32 = arith.constant 0 : i32
    %0 = arith.cmpi eq, %arg1, %c0_i32 : i32
    %1 = arith.extui %0 : i1 to i32
    %c0_i32_0 = arith.constant 0 : i32
    %2 = arith.cmpi ne, %1, %c0_i32_0 : i32
    scf.if %2 {
      %cst_27 = arith.constant 0.000000e+00 : f32
      %35 = vector.broadcast %cst_27 : f32 to vector<8x32xf32>
      %c0_28 = arith.constant 0 : index
      %c0_29 = arith.constant 0 : index
      %36 = vector.load %arg9[%c0_28, %c0_29] : memref<8x32xf32, #tpu.memory_space<vmem>>, vector<8x32xf32>
      tpu.vector_store %arg9[%c0_28, %c0_29], %35 {strides = array<i32>} : memref<8x32xf32, #tpu.memory_space<vmem>>, vector<8x32xf32>,
    } else {
    }
    %c0 = arith.constant 0 : index
    %c0_1 = arith.constant 0 : index
    %c0_2 = arith.constant 0 : index
    %3 = vector.load %arg2[%c0, %c0_1, %c0_2] : memref<1x8x32xf32, #tpu.memory_space<vmem>>, vector<1x8x32xf32>
    %4 = vector.shape_cast %3 : vector<1x8x32xf32> to vector<8x32xf32>
    %c0_3 = arith.constant 0 : index
    %c0_4 = arith.constant 0 : index
    %c0_5 = arith.constant 0 : index
    %5 = vector.load %arg3[%c0_3, %c0_4, %c0_5] : memref<1x32x16xf32, #tpu.memory_space<vmem>>, vector<1x32x16xf32>
    %6 = vector.shape_cast %5 : vector<1x32x16xf32> to vector<32x16xf32>
    %cst = arith.constant dense<0.000000e+00> : vector<8x16xf32>
    %7 = tpu.matmul %4, %6, %cst {dimension_numbers = #tpu.dot_dimension_numbers<[1], [0], [0], [1], [0, 0, 1, 1], [], []>} : vector<8x32xf32>, vector<32x16xf32>, vector<8x16xf32> -> vector<8x16xf32>
    %c0_6 = arith.constant 0 : index
    %c0_7 = arith.constant 0 : index
    %c0_8 = arith.constant 0 : index
    %8 = vector.load %arg4[%c0_6, %c0_7, %c0_8] : memref<1x32x16xf32, #tpu.memory_space<vmem>>, vector<1x32x16xf32>
    %9 = vector.shape_cast %8 : vector<1x32x16xf32> to vector<32x16xf32>
    %cst_9 = arith.constant dense<0.000000e+00> : vector<8x16xf32>
    %10 = tpu.matmul %4, %9, %cst_9 {dimension_numbers = #tpu.dot_dimension_numbers<[1], [0], [0], [1], [0, 0, 1, 1], [], []>} : vector<8x32xf32>, vector<32x16xf32>, vector<8x16xf32> -> vector<8x16xf32>
    %c0_10 = arith.constant 0 : index
    %c0_11 = arith.constant 0 : index
    %c0_12 = arith.constant 0 : index
    %11 = vector.load %arg5[%c0_10, %c0_11, %c0_12] : memref<1x32x16xf32, #tpu.memory_space<vmem>>, vector<1x32x16xf32>
    %12 = vector.shape_cast %11 : vector<1x32x16xf32> to vector<32x16xf32>
    %cst_13 = arith.constant dense<0.000000e+00> : vector<8x16xf32>
    %13 = tpu.matmul %4, %12, %cst_13 {dimension_numbers = #tpu.dot_dimension_numbers<[1], [0], [0], [1], [0, 0, 1, 1], [], []>} : vector<8x32xf32>, vector<32x16xf32>, vector<8x16xf32> -> vector<8x16xf32>
    %cst_14 = arith.constant dense<0.000000e+00> : vector<8x8xf32>
    %14 = tpu.matmul %7, %10, %cst_14 {dimension_numbers = #tpu.dot_dimension_numbers<[1], [1], [0], [0], [0, 0, 1, 0], [], []>} : vector<8x16xf32>, vector<8x16xf32>, vector<8x8xf32> -> vector<8x8xf32>
    %cst_15 = arith.constant dense<0xFF800000> : vector<8xf32>
    %15 = vector.multi_reduction <maximumf>, %14, %cst_15 [1] : vector<8x8xf32> to vector<8xf32>
    %16 = vector.shape_cast %15 : vector<8xf32> to vector<8x1xf32>
    %17 = vector.broadcast %16 : vector<8x1xf32> to vector<8x8xf32>
    %18 = arith.subf %14, %17 : vector<8x8xf32>
    %19 = math.exp %18 : vector<8x8xf32>
    %cst_16 = arith.constant dense<0.000000e+00> : vector<8xf32>
    %20 = vector.multi_reduction <add>, %19, %cst_16 [1] : vector<8x8xf32> to vector<8xf32>
    %21 = vector.shape_cast %20 : vector<8xf32> to vector<8x1xf32>
    %22 = tpu.reciprocal %21 {approx = true} : vector<8x1xf32> -> vector<8x1xf32>
    %23 = vector.broadcast %22 : vector<8x1xf32> to vector<8x8xf32>
    %24 = arith.mulf %19, %23 : vector<8x8xf32>
    %cst_17 = arith.constant dense<0.000000e+00> : vector<8x16xf32>
    %25 = tpu.matmul %24, %13, %cst_17 {dimension_numbers = #tpu.dot_dimension_numbers<[1], [0], [0], [1], [0, 0, 1, 1], [], []>} : vector<8x8xf32>, vector<8x16xf32>, vector<8x16xf32> -> vector<8x16xf32>
    %c0_18 = arith.constant 0 : index
    %c0_19 = arith.constant 0 : index
    %26 = vector.load %arg9[%c0_18, %c0_19] : memref<8x32xf32, #tpu.memory_space<vmem>>, vector<8x32xf32>
    %c0_20 = arith.constant 0 : index
    %c0_21 = arith.constant 0 : index
    %c0_22 = arith.constant 0 : index
    %27 = vector.load %arg6[%c0_20, %c0_21, %c0_22] : memref<1x16x32xf32, #tpu.memory_space<vmem>>, vector<1x16x32xf32>
    %28 = vector.shape_cast %27 : vector<1x16x32xf32> to vector<16x32xf32>
    %cst_23 = arith.constant dense<0.000000e+00> : vector<8x32xf32>
    %29 = tpu.matmul %25, %28, %cst_23 {dimension_numbers = #tpu.dot_dimension_numbers<[1], [0], [0], [1], [0, 0, 1, 1], [], []>} : vector<8x16xf32>, vector<16x32xf32>, vector<8x32xf32> -> vector<8x32xf32>
    %30 = arith.addf %26, %29 : vector<8x32xf32>
    %c0_24 = arith.constant 0 : index
    %c0_25 = arith.constant 0 : index
    %31 = vector.load %arg9[%c0_24, %c0_25] : memref<8x32xf32, #tpu.memory_space<vmem>>, vector<8x32xf32>
    tpu.vector_store %arg9[%c0_24, %c0_25], %30 {strides = array<i32>} : memref<8x32xf32, #tpu.memory_space<vmem>>, vector<8x32xf32>,
    %c1_i32 = arith.constant 1 : i32
    %32 = arith.cmpi eq, %arg1, %c1_i32 : i32
    %33 = arith.extui %32 : i1 to i32
    %c0_i32_26 = arith.constant 0 : i32
    %34 = arith.cmpi ne, %33, %c0_i32_26 : i32
    scf.if %34 {
      %c0_27 = arith.constant 0 : index
      %c0_28 = arith.constant 0 : index
      %35 = vector.load %arg9[%c0_27, %c0_28] : memref<8x32xf32, #tpu.memory_space<vmem>>, vector<8x32xf32>
      %c0_29 = arith.constant 0 : index
      %c0_30 = arith.constant 0 : index
      %36 = vector.load %arg7[%c0_29, %c0_30] : memref<1x32xf32, #tpu.memory_space<vmem>>, vector<1x32xf32>
      %37 = vector.broadcast %36 : vector<1x32xf32> to vector<8x32xf32>
      %38 = arith.addf %35, %37 : vector<8x32xf32>
      %c0_31 = arith.constant 0 : index
      %c0_32 = arith.constant 0 : index
      %c0_33 = arith.constant 0 : index
      %39 = vector.load %arg8[%c0_31, %c0_32, %c0_33] : memref<1x8x32xf32, #tpu.memory_space<vmem>>, vector<1x8x32xf32>
      %40 = vector.shape_cast %39 : vector<1x8x32xf32> to vector<8x32xf32>
      %41 = vector.shape_cast %38 : vector<8x32xf32> to vector<1x8x32xf32>
      tpu.vector_store %arg8[%c0_31, %c0_32, %c0_33], %41 {strides = array<i32>} : memref<1x8x32xf32, #tpu.memory_space<vmem>>, vector<1x8x32xf32>,
    } else {
    }
    return
  }
  func.func @transform_0(%arg0: i32, %arg1: i32) -> (i32, i32, i32) {
    %c0_i32 = arith.constant 0 : i32
    %c0_i32_0 = arith.constant 0 : i32
    %c0_i32_1 = arith.constant 0 : i32
    return %arg0, %c0_i32, %c0_i32_0 : i32, i32, i32
  }
  func.func @transform_1(%arg0: i32, %arg1: i32) -> (i32, i32, i32) {
    %c0_i32 = arith.constant 0 : i32
    %c0_i32_0 = arith.constant 0 : i32
    %c0_i32_1 = arith.constant 0 : i32
    return %arg1, %c0_i32, %c0_i32_0 : i32, i32, i32
  }
  func.func @transform_2(%arg0: i32, %arg1: i32) -> (i32, i32, i32) {
    %c0_i32 = arith.constant 0 : i32
    %c0_i32_0 = arith.constant 0 : i32
    %c0_i32_1 = arith.constant 0 : i32
    return %arg1, %c0_i32, %c0_i32_0 : i32, i32, i32
  }
  func.func @transform_3(%arg0: i32, %arg1: i32) -> (i32, i32, i32) {
    %c0_i32 = arith.constant 0 : i32
    %c0_i32_0 = arith.constant 0 : i32
    %c0_i32_1 = arith.constant 0 : i32
    return %arg1, %c0_i32, %c0_i32_0 : i32, i32, i32
  }
  func.func @transform_4(%arg0: i32, %arg1: i32) -> (i32, i32, i32) {
    %c0_i32 = arith.constant 0 : i32
    %c0_i32_0 = arith.constant 0 : i32
    %c0_i32_1 = arith.constant 0 : i32
    return %arg1, %c0_i32, %c0_i32_0 : i32, i32, i32
  }
  func.func @transform_5(%arg0: i32, %arg1: i32) -> (i32, i32) {
    %c0_i32 = arith.constant 0 : i32
    %c0_i32_0 = arith.constant 0 : i32
    %c0_i32_1 = arith.constant 0 : i32
    return %c0_i32, %c0_i32_0 : i32, i32
  }
  func.func @transform_6(%arg0: i32, %arg1: i32) -> (i32, i32, i32) {
    %c0_i32 = arith.constant 0 : i32
    %c0_i32_0 = arith.constant 0 : i32
    %c0_i32_1 = arith.constant 0 : i32
    return %arg0, %c0_i32, %c0_i32_0 : i32, i32, i32
  }
}

</mosaic_0001>

<bundles_post_ra>
// kernel: tpu_custom_call.1
= control target key start
LH: loop header
LB: loop body
LE: loop exit
PB: predicated region body
PF: predicated region fallthrough
CT: control target
= control target key end

     0   :  { %11 = vsyncpa [#allocation4], 0  ;;  %s1066_s0 = inlined_call_operand.vmem [shape: f32[2,8,32], index: 0, kind: input, shape index: {}]   ;;  %s1067_s1 = inlined_call_operand.vmem [shape: f32[2,32,16], index: 1, kind: input, shape index: {}]   ;;  %s1068_s2 = inlined_call_operand.vmem [shape: f32[2,32,16], index: 2, kind: input, shape index: {}]   ;;  %s1069_s3 = inlined_call_operand.vmem [shape: f32[2,32,16], index: 3, kind: input, shape index: {}]   ;;  %s1070_s4 = inlined_call_operand.vmem [shape: f32[2,16,32], index: 4, kind: input, shape index: {}]   ;;  %s1071_s5 = inlined_call_operand.vmem [shape: f32[1,32], index: 5, kind: input, shape index: {}]   ;;  %s1072_s6 = inlined_call_operand.hbm [shape: f32[2,8,32], index: 6, kind: output, shape index: {}]  }
   0x1   :  { %13 = vsyncpa [#allocation4 + $0x1], 0  ;;  %s898_s21 = smov 0   ;;  %s900_s22 = smov 0  }
   0x2   :  { %s902_s23 = smov 0   ;;  %s904_s24 = smov 0  }
   0x3   :  { %s906_s25 = smov 0   ;;  %s908_s26 = smov 0  }
   0x4   :  { %s910_s27 = smov 0   ;;  %s912_s28 = smov 0  }
   0x5 LB: > { %1080 = sst [smem:[#allocation6_spill]] %s832_s21  ;;  %s657_s29 = sadd.s32 4294967295, %s860_s28   ;;  %s860_s28 = sphi %s912_s28, %s19_s28   ;;  %s856_s27 = sphi %s910_s27, %s1098_s27   ;;  %s852_s26 = sphi %s908_s26, %s1102_s26   ;;  %s848_s25 = sphi %s906_s25, %s1096_s25   ;;  %s844_s24 = sphi %s904_s24, %s1095_s24   ;;  %s840_s23 = sphi %s902_s23, %s1101_s23   ;;  %s836_s22 = sphi %s900_s22, %s1100_s22   ;;  %s832_s21 = sphi %s898_s21, %s1099_s21  }
   0x6   : > { %1081 = sst [smem:[#allocation7_spill]] %s840_s23  ;;  %s658_s30 = sadd.s32 4294967294, %s860_s28  }
   0x7   : > { %1082 = sst [smem:[#allocation8_spill]] %s852_s26  ;;  %s28_s7 = sadd.s32 1, %s852_s26 }
   0x8   : > { %1083 = sst [smem:[#allocation9_spill]] %s856_s27  ;;  %p29_p0 = scmp.ge.s32.totalorder %s28_s7, 2 }
   0x9   : > { %s31_s8 = sadd.s32 1, %s856_s27  ;;  %p199_p1 = scmp.ne.s32.totalorder %s840_s23, %s836_s22 }
   0xa   : > { %p200_p2 = scmp.eq.s32.totalorder %s657_s29, 3  ;;  %s1104_s7 = smov (%p29_p0, %s28_s7), 0 }
   0xb   : > { %1084 = sst [smem:[#allocation10_spill]] %s1104_s7  ;;  %s1106_s8 = smov (!%p29_p0, %s31_s8), %s856_s27 }
   0xc   : > { %p947_p3 = por %p200_p2, %p199_p1  ;;  %p205_p4 = scmp.ne.s32.totalorder %s836_s22, %s832_s21 }
   0xd   : > { %p33_p5 = scmp.ge.s32.totalorder %s1106_s8, 2  ;;  %p206_p6 = scmp.eq.s32.totalorder %s658_s30, 3 }
   0xe   : > { %p661_p7 = scmp.ge.s32.totalorder %s860_s28, 1  ;;  %p266_p8 = scmp.lt.s32.totalorder %s860_s28, 5 }
   0xf   : > { %s1108_s8 = smov (%p33_p5, %s1106_s8), 0  ;;  %p957_p9 = por %p206_p6, %p205_p4 }
  0x10   : > { %1086 = sst [smem:[#allocation11_spill]] %s1108_s8  ;;  %p267_p10 = pnand %p661_p7, %p266_p8 }
  0x11   : > { %s1087_s10 = scalar_select %p957_p9, 1, 0 }
  0x12   : > { %s186_s11 = ssub.s32 %s856_s27, %s1108_s8  ;;  %s189_s12 = sadd.s32 1, %s840_s23 }
  0x13   : > { %1088 = sst [smem:[#allocation12_spill]] %s1087_s10  ;;  %p187_p11 = scmp.eq.s32.totalorder %s186_s11, 0 }
  0x14   : > { %270 = sbr.rel (%p267_p10) target bundleno = 843 (0x34b), region = 44  ;;  %s1076_s14 = sand.u32 (!%p267_p10), 1, %s836_s22  }
  0x15   : > { %s965_s13 = scalar_select %p187_p11, %s840_s23, %s189_s12  }
  0x16   : > { %p315_p12 = scmp.lt.s32.totalorder (!%p267_p10), %s848_s25, 1  ;;  %s971_s15 = sshll.u32 (!%p267_p10), %s1076_s14, 3 }
  0x17   : > { %1089 = sst [smem:[#allocation13_spill]] %s965_s13  ;;  %p319_p13 = scmp.lt.s32.totalorder (!%p267_p10), %s844_s24, 1 }
  0x18   : > { %p672_p0 = scmp.ne.s32.totalorder (!%p267_p10), %s844_s24, 0 }
  0x19   : > { %s316_s16 = scalar_select %p315_p12, %s848_s25, 1 }
  0x1a   : > { %s320_s17 = scalar_select %p319_p13, %s844_s24, 1 }
  0x1b   : > { %s663_s18 = sshll.u32 %s316_s16, 3  ;;  %342 = sbr.rel (%p672_p0) target bundleno = 34 (0x22), region = 48 }
  0x1c   : > { %s318_s29 = scalar_lea.vmem %s1066_s0, %s663_s18  ;;  %s685_s30 = sshll.u32 %s320_s17, 5 }
  0x1d   : > { %s323_s8 = scalar_lea.vmem %s1067_s1, %s685_s30  ;;  %s328_s26 = scalar_lea.vmem %s1068_s2, %s685_s30 }
  0x1e   : > { %s988_s23 = scalar_lea.vmem %s1069_s3, %s685_s30  ;;  %s688_s10 = sshll.u32 %s320_s17, 4 }
  0x1f   : > { %s993_s19 = scalar_lea.vmem %s1070_s4, %s688_s10  ;;  %s314_s18 = scalar_lea.vmem [#allocation3], %s971_s15 }
  0x20   : > { %vm343_vm0 = vcmask 261120   ;;  %v862_v0 = vmov 0.0  }
  0x21   : > { %344 = vst.msk [vmem:[#allocation2] sm:$0xff] %vm343_vm0, %v862_v0 }
  0x22 PF: > { %v377_v1 = vld [vmem:[%s328_s26 + $0x18] sm:$0xff]  ;;  %v376_v2 = vld [vmem:[%s328_s26 + $0x10] sm:$0xff]  ;;  %v375_v5 = vld [vmem:[%s328_s26 + $0x8] sm:$0xff]  ;;  %vm350_vm1 = vcmask 261120   ;;  %vm422_vm2 = vcmask 130048   ;;  %vm449_vm3 = vcmask 64512  }
  0x23   : > { %v349_v3 = vld [vmem:[%s323_s8 + $0x18] sm:$0xff]  ;;  %390 = vmatpush.msra.mxu1 %v377_v1  ;;  %v348_v4 = vld [vmem:[%s323_s8 + $0x10] sm:$0xff]  ;;  %v347_v6 = vld [vmem:[%s323_s8 + $0x8] sm:$0xff]  ;;  %p680_p1 = scmp.ne.s32.totalorder %s844_s24, 1 }
  0x24   : > { %366 = vmatpush.msra.mxu0 %v349_v3  ;;  %v374_v7 = vld [vmem:[%s328_s26] sm:$0xff]  ;;  %v401_v12 = vld [vmem:[%s988_s23 + $0x18] sm:$0xff]  ;;  %v400_v13 = vld [vmem:[%s988_s23 + $0x10] sm:$0xff] }
  0x25   : > { %391 = vmatpush.msra.mxu1 %v376_v2  ;;  %v346_v8 = vld [vmem:[%s323_s8] sm:$0xff]  ;;  %414 = vmatpush.msra.mxu2 %v401_v12  ;;  %v399_v14 = vld [vmem:[%s988_s23 + $0x8] sm:$0xff] }
  0x26   : > { %367 = vmatpush.msra.mxu0 %v348_v4  ;;  %v345_v9 = vld [vmem:[%s318_s29] sm:$0xff]  ;;  %v486_v24 = vld [vmem:[%s993_s19 + $0x8] sm:$0xff] }
  0x27   : > { %392 = vmatpush.msra.mxu1 %v375_v5  ;;  %415 = vmatpush.msra.mxu2 %v400_v13  ;;  %v398_v15 = vld [vmem:[%s988_s23] sm:$0xff] }
  0x28   : > { %368 = vmatpush.msra.mxu0 %v347_v6  ;;  %v485_v25 = vld [vmem:[%s993_s19] sm:$0xff] }
  0x29   : > { %393 = vmatpush.msra.mxu1 %v374_v7  ;;  %416 = vmatpush.msra.mxu2 %v399_v14  ;;  %v484_v30 = vld [vmem:[#allocation2] sm:$0xff] }
  0x2a   : > { %369 = vmatpush.msra.mxu0 %v346_v8  ;;  %674 = vmatmul.msk.f32.vlgmr.msra.gmra.mxu1 %vm350_vm1, %v345_v9 }
  0x2b   : > { %673 = vmatmul.msk.f32.vlgmr.msra.gmra.mxu0 %vm350_vm1, %v345_v9  ;;  %417 = vmatpush.msra.mxu2 %v398_v15 }
  0x2c   : > { %675 = vmatmul.msk.f32.vlgmr.msra.gmra.mxu2 %vm350_vm1, %v345_v9  ;;  %504 = vmatpush.msrb.mxu0 %v486_v24 }
  0x2e   : > { %505 = vmatpush.msrb.mxu0 %v485_v25 }
  0xa7   : > { %v395_v10 = vpop.f32.mrf.mxu1 }
  0xa8   : > { %676 = vmatpush.xpose.msk.msra.mxu3 %vm422_vm2, %v395_v10  ;;  %v371_v11 = vpop.f32.mrf.mxu0 }
  0xab   : > { %677 = vmatmul.msk.f32.vlgmr.msra.gmra.mxu3 %vm422_vm2, %v371_v11 }
  0xaf   : > { %v419_v23 = vpop.f32.mrf.mxu2 }
  0xb0   : > { %479 = vmatpush.msrb.mxu3 %v419_v23 }
 0x12e   : > { %v446_v16 = vpop.f32.mrf.mxu3 }
 0x12f   : > { %v450_v17 = vsel %vm449_vm3, %v446_v16, -inf }
 0x130   : > { %451 = vmax.xlane.f32.xlu0 %v450_v17 }
 0x1a3   : > { %v452_v18 = vpop.xlane.xlu0 %451 }
 0x1a4   : > { %v453_v19 = vsub.f32 %v446_v16, %v452_v18 }
 0x1a6   : > { %v454_v20 = vmul.f32 1.442695, %v453_v19 }
 0x1a8   : > { %761 = vpow2.f32 %v454_v20 }
 0x1ae   : > { %v762_v21 = vpop.eup %761 }
 0x1af   : > { %v456_v22 = vsel %vm449_vm3, %v762_v21, 0.0 }
 0x1b0   : > { %457 = vadd.xlane.f32.xlu0 %v456_v22 }
 0x223   : > { %v458_v26 = vpop.xlane.xlu0 %457 }
 0x224   : > { %763 = vrcp.f32 %v458_v26 }
 0x22a   : > { %v764_v27 = vpop.eup %763 }
 0x22b   : > { %v460_v28 = vmul.f32 %v764_v27, %v762_v21 }
 0x22d   : > { %678 = vmatmul.msk.f32.vlgmr.msrb.gmra.mxu3 %vm449_vm3, %v460_v28 }
 0x2b0   : > { %v481_v29 = vpop.f32.mrf.mxu3 }
 0x2b1   : > { %679 = vmatmul.msk.f32.vlgmr.msrb.gmra.mxu0 %vm422_vm2, %v481_v29 }
 0x32d   : > { %515 = sbr.rel (%p680_p1) target bundleno = 828 (0x33c), region = 52 }
 0x32e   : > { %v507_v31 = vpop.f32.mrf.mxu0 }
 0x32f   : > { %v510_v32 = vadd.f32 %v507_v31, %v484_v30 }
 0x331   : > { %511 = vst.msk [vmem:[#allocation2] sm:$0xff] %vm350_vm1, %v510_v32 }
 0x332   : > { %v765_v34 = vld [vmem:[%s1071_s5] ss:$0 sm:$0xff] }
 0x338   : > { %v516_v33 = vld [vmem:[#allocation2] sm:$0xff] }
 0x339   : > { %v521_v35 = vadd.f32 %v765_v34, %v516_v33 }
 0x33b   : > { %522 = vst.msk [vmem:[%s314_s18] sm:$0xff] %vm350_vm1, %v521_v35 }
 0x33c PF: > { %s682_s26 = sshll.u32 %s848_s25, 3  ;;  %s536_s8 = sshll.u32 %s314_s18, 4  ;;  %s537_s8 = int_to_ptr.vmem [resolvable:$true] %s536_s8 }
 0x33d   : > { %s534_s24 = scalar_lea.hbm %s1072_s6, %s682_s26  ;;  %s1090_s13 = sand.u32 1, %s836_s22  }
 0x33e   : > { %s538_s10 = sshll.u32 %s534_s24, 4  ;;  %s524_s14 = scalar_lea.sflag [#allocation4], %s1090_s13  ;;  %s539_s10 = int_to_ptr.hbm [resolvable:$true] %s538_s10 }
 0x33f   : > { %s780_s17 = sshra.s32 %s539_s10, 4  ;;  %s786_s30 = scalar_lea.hbm %s1072_s6, 16  ;;  %s781_s17 = int_to_ptr.hbm [resolvable:$true] %s780_s17 }
 0x340   : > { %s782_s20 = scalar_lea.hbm %s781_s17, 8  ;;  %p787_p6 = scmp.lt.s32.totalorder %s781_s17, %s1072_s6 }
 0x341   : > { %p783_p2 = scmp.ne.s32.totalorder %s781_s17, %s782_s20  ;;  %p788_p7 = scmp.lt.s32.totalorder %s786_s30, %s782_s20 }
 0x343   : > { %p784_p4 = pnand %p783_p2, %p947_p3  ;;  %p789_p8 = por %p788_p7, %p787_p6 }
 0x345   : > { %p785_p5 = pneg %p784_p4 }
 0x347   : > { %p790_p10 = pnand %p789_p8, %p785_p5 }
 0x349   : > { %793 = shalt.err (!%p790_p10)
}
 0x34a   : > { %689 = dma.vmem_to_hbm [thread:$0]  (%p947_p3), %s537_s8, 128, %s539_s10, %s524_s14  }
 0x34b PF: > { %s1091_s15 = sld [smem:[#allocation6_spill]]  ;;  %p695_p11 = scmp.ge.s32.totalorder %s860_s28, 2 }
 0x34d   : > { %p692_p12 = pnand %p695_p11, %p957_p9 }
 0x34f   : > { %p693_p13 = pneg %p692_p12 }
 0x351   : > { %s550_s19 = sand.u32 1, %s1091_s15  }
 0x352   : > { %s551_s18 = scalar_lea.sflag [#allocation4], %s550_s19 }
 0x353   : > { %827 = dma.done.wait (%p693_p13), %s551_s18, 128  }
 0x354   : > { %829 = vsyncadd (%p693_p13), %s551_s18, 4294967168  ;;  %s19_s28 = sadd.s32 1, %s860_s28   ;;  %s1093_s23 = sld [smem:[#allocation7_spill]] }
 0x355   : > { %p16_p0 = scmp.ge.s32.totalorder %s19_s28, 6   ;;  %s1094_s26 = sld [smem:[#allocation13_spill]] }
 0x356   : > { %s1095_s24 = sld [smem:[#allocation8_spill]]  ;;  %s1099_s21 = smov %s836_s22 }
 0x357   : > { %s1096_s25 = sld [smem:[#allocation9_spill]] }
 0x358   : > { %s1097_s9 = sld [smem:[#allocation10_spill]] }
 0x359   : > { %s1098_s27 = sld [smem:[#allocation11_spill]] }
 0x35a   : > { %s1100_s22 = smov %s1093_s23  ;;  %18 = sbr.rel (!%p16_p0) target bundleno = 5 (0x5), region = 99 }
 0x35b   : > { %s1101_s23 = smov %s1094_s26 }
 0x35e   : > { %s1102_s26 = smov %s1097_s9 }
 0x35f   :  { %557 = vsyncpa [#allocation4], 1 }
 0x360   :  { %559 = vsyncpa [#allocation4 + $0x1], 1 }

</bundles_post_ra>
